<compile_context>
chip_gen: v7x
topology: tpu7x:2x2x1
jax: 0.10.0
libtpu: 0.0.40
codegen_flags: <defaults>
</compile_context>

<pallas_src>
import jax
import jax.numpy as jnp
from jax.experimental import pallas as pl
from jax.experimental.pallas import tpu as pltpu

HIDDEN = (256, 128, 64)
LANE = 128


def _round_up(x, m):
    return (x + m - 1) // m * m


def mlp_kernel(x_ref, w1_ref, b1_ref, w2_ref, b2_ref,
               w3_ref, b3_ref, w4_ref, b4_ref, o_ref):
    # Cast the f32 input tile to bf16 in-kernel (avoids a separate XLA cast
    # pass over x in HBM).
    x = x_ref[...].astype(w1_ref.dtype)
    # fc1..fc3: bf16 operands on the MXU, f32 accumulate; bias+ReLU in f32 (VPU).
    h = jnp.dot(x, w1_ref[...], preferred_element_type=jnp.float32)
    h = jnp.maximum(h + b1_ref[...], 0.0).astype(w2_ref.dtype)
    h = jnp.dot(h, w2_ref[...], preferred_element_type=jnp.float32)
    h = jnp.maximum(h + b2_ref[...], 0.0).astype(w3_ref.dtype)
    h = jnp.dot(h, w3_ref[...], preferred_element_type=jnp.float32)
    h = jnp.maximum(h + b3_ref[...], 0.0).astype(w4_ref.dtype)
    # fc4: logits, lane-padded to a multiple of 128 columns (no activation).
    out = jnp.dot(h, w4_ref[...], preferred_element_type=jnp.float32)
    o_ref[...] = (out + b4_ref[...]).astype(o_ref.dtype)


def _choose_tile(n, tile_n):
    """Batch tile: as large as allowed (amortize per-step overhead), sublane
    friendly (multiple of 16), and keeping >=2 grid steps when the batch allows
    so dimension_semantics=("parallel",) can use both TensorCores on v7x."""
    if n <= 32:
        return n  # single full-array block (block shape == array shape)
    return max(16, min(tile_n, _round_up(pl.cdiv(n, 2), 16)))


def _resident_spec(arr, single_buffer):
    """Full-array block + constant index map => VMEM-resident across the grid."""
    if single_buffer:
        # Constant index map: the block never changes, so one buffer suffices.
        return pl.BlockSpec(arr.shape, lambda i: (0,) * arr.ndim,
                            pipeline_mode=pl.Buffered(1))
    return pl.BlockSpec(arr.shape, lambda i: (0,) * arr.ndim)


def mlp_forward(x, kernel_params, n_classes, *, tile_n=4096,
                out_dtype=jnp.bfloat16):
    """x: (N, D) float32.

    kernel_params: (w1,b1,...,w4,b4) with bf16 weights stored as
    (fan_in, fan_out), f32 biases stored as (1, fan_out), and the last layer
    lane-padded to a multiple of 128 columns (see prepare_kernel_params).
    Returns (N, n_classes) logits in `out_dtype`.
    """
    n, d = x.shape
    w1, b1, w2, b2, w3, b3, w4, b4 = kernel_params
    out_p = w4.shape[-1]

    tile = _choose_tile(n, tile_n)
    grid = (pl.cdiv(n, tile),)
    n_eff = grid[0] * tile

    flops = 2 * n_eff * sum(w.shape[0] * w.shape[1] for w in (w1, w2, w3, w4))
    bytes_accessed = int(x.size * x.dtype.itemsize
                         + sum(p.size * p.dtype.itemsize for p in kernel_params)
                         + n_eff * out_p * jnp.dtype(out_dtype).itemsize)

    def call(single_buffer_weights):
        return pl.pallas_call(
            mlp_kernel,
            out_shape=jax.ShapeDtypeStruct((n, out_p), out_dtype),
            grid=grid,
            in_specs=[
                pl.BlockSpec((tile, d), lambda i: (i, 0)),
                _resident_spec(w1, single_buffer_weights),
                _resident_spec(b1, single_buffer_weights),
                _resident_spec(w2, single_buffer_weights),
                _resident_spec(b2, single_buffer_weights),
                _resident_spec(w3, single_buffer_weights),
                _resident_spec(b3, single_buffer_weights),
                _resident_spec(w4, single_buffer_weights),
                _resident_spec(b4, single_buffer_weights),
            ],
            out_specs=pl.BlockSpec((tile, out_p), lambda i: (i, 0)),
            compiler_params=pltpu.CompilerParams(
                dimension_semantics=("parallel",),
                vmem_limit_bytes=32 * 1024 * 1024,
            ),
            cost_estimate=pl.CostEstimate(
                flops=flops, transcendentals=0, bytes_accessed=bytes_accessed),
        )(x, *kernel_params)

    try:
        out = call(single_buffer_weights=True)
    except Exception:
        # Fallback if Buffered(1) pipeline_mode is not supported by this JAX:
        # default double-buffering only costs ~112 KiB of extra VMEM here.
        out = call(single_buffer_weights=False)

    # NOTE: this column slice is an extra HBM pass over the padded logits;
    # consumers (softmax / loss / argmax) should fuse it when latency matters.
    return out[:, :n_classes]


def init_params(key, input_size, n_classes):
    """f32 logical params mimicking nn.Linear default init (uniform +/- 1/sqrt(fan_in)).
    Weights are stored as (fan_in, fan_out) == transpose of PyTorch's (out, in)."""
    dims = [input_size, *HIDDEN, n_classes]
    params = []
    for i in range(4):
        fan_in, fan_out = dims[i], dims[i + 1]
        key, kw, kb = jax.random.split(key, 3)
        bound = 1.0 / jnp.sqrt(float(fan_in))
        w = jax.random.uniform(kw, (fan_in, fan_out), jnp.float32, -bound, bound)
        b = jax.random.uniform(kb, (1, fan_out), jnp.float32, -bound, bound)
        params.extend([w, b])
    return tuple(params)


def prepare_kernel_params(params):
    """Cast weights to bf16 and lane-pad the final layer to a multiple of 128."""
    w1, b1, w2, b2, w3, b3, w4, b4 = params
    out_p = _round_up(max(w4.shape[-1], LANE), LANE)
    pad = out_p - w4.shape[-1]
    w4 = jnp.pad(w4, ((0, 0), (0, pad)))
    b4 = jnp.pad(b4, ((0, 0), (0, pad)))
    bf16 = lambda w: w.astype(jnp.bfloat16)
    return (bf16(w1), b1, bf16(w2), b2, bf16(w3), b3, bf16(w4), b4)


def mlp_reference_f32(x, params):
    """Pure f32 reference with PyTorch semantics."""
    w1, b1, w2, b2, w3, b3, w4, b4 = params
    h = jnp.maximum(x @ w1 + b1, 0.0)
    h = jnp.maximum(h @ w2 + b2, 0.0)
    h = jnp.maximum(h @ w3 + b3, 0.0)
    return h @ w4 + b4


def mlp_reference_kernel_math(x, kernel_params, n_classes,
                              out_dtype=jnp.bfloat16):
    """Mirrors the kernel's bf16-operand / f32-accumulate / bf16-store arithmetic."""
    w1, b1, w2, b2, w3, b3, w4, b4 = kernel_params
    h = x.astype(jnp.bfloat16)
    for w, b in ((w1, b1), (w2, b2), (w3, b3)):
        h = jnp.maximum(jnp.dot(h, w, preferred_element_type=jnp.float32) + b, 0.0)
        h = h.astype(jnp.bfloat16)
    out = (jnp.dot(h, w4, preferred_element_type=jnp.float32) + b4).astype(out_dtype)
    return out[:, :n_classes].astype(jnp.float32)


if __name__ == "__main__":
    input_size = 32
    n_classes = 10

    key = jax.random.PRNGKey(0)
    key, kx, kx2 = jax.random.split(key, 3)
    params = init_params(key, input_size, n_classes)
    kparams = prepare_kernel_params(params)

    # Small batch: single full-array block, grid of 1.
    x = jax.random.normal(kx, (2, input_size), jnp.float32)
    logits = jax.block_until_ready(mlp_forward(x, kparams, n_classes))
    assert logits.shape == (2, n_classes), logits.shape
    assert jnp.allclose(logits.astype(jnp.float32),
                        mlp_reference_kernel_math(x, kparams, n_classes),
                        atol=2e-2, rtol=2e-2), "mismatch vs bf16-faithful reference"
    assert jnp.allclose(logits.astype(jnp.float32),
                        mlp_reference_f32(x, params),
                        atol=8e-2, rtol=8e-2), "mismatch vs f32 reference"

    # Batch not divisible by the tile: exercises the cdiv grid and the masked
    # partial last block (no wrapper-side padding of x).
    x2 = jax.random.normal(kx2, (100, input_size), jnp.float32)
    logits2 = jax.block_until_ready(mlp_forward(x2, kparams, n_classes))
    assert logits2.shape == (100, n_classes), logits2.shape
    assert jnp.allclose(logits2.astype(jnp.float32),
                        mlp_reference_kernel_math(x2, kparams, n_classes),
                        atol=2e-2, rtol=2e-2), "mismatch on partial-block batch"

    print("KERNEL_OK")
</pallas_src>

<mosaic_0001>
module attributes {stable_mosaic.version = 11 : i64} {
  func.func @mlp_kernel(%arg0: i32, %arg1: memref<2x32xf32, #tpu.memory_space<vmem>>, %arg2: memref<32x256xbf16, #tpu.memory_space<vmem>>, %arg3: memref<1x256xf32, #tpu.memory_space<vmem>>, %arg4: memref<256x128xbf16, #tpu.memory_space<vmem>>, %arg5: memref<1x128xf32, #tpu.memory_space<vmem>>, %arg6: memref<128x64xbf16, #tpu.memory_space<vmem>>, %arg7: memref<1x64xf32, #tpu.memory_space<vmem>>, %arg8: memref<64x128xbf16, #tpu.memory_space<vmem>>, %arg9: memref<1x128xf32, #tpu.memory_space<vmem>>, %arg10: memref<2x128xbf16, #tpu.memory_space<vmem>>) attributes {dimension_semantics = [#tpu.dimension_semantics<parallel>], iteration_bounds = array<i64: 1>, scalar_prefetch = 0 : i64, scratch_operands = 0 : i64, tpu.core_type = #tpu.core_type<tc>, window_params = [{transform_indices = @transform_0, window_bounds = array<i64: 2, 32>}, {pipeline_mode = #tpu.pipeline_mode<synchronous>, transform_indices = @transform_1, window_bounds = array<i64: 32, 256>}, {pipeline_mode = #tpu.pipeline_mode<synchronous>, transform_indices = @transform_2, window_bounds = array<i64: 1, 256>}, {pipeline_mode = #tpu.pipeline_mode<synchronous>, transform_indices = @transform_3, window_bounds = array<i64: 256, 128>}, {pipeline_mode = #tpu.pipeline_mode<synchronous>, transform_indices = @transform_4, window_bounds = array<i64: 1, 128>}, {pipeline_mode = #tpu.pipeline_mode<synchronous>, transform_indices = @transform_5, window_bounds = array<i64: 128, 64>}, {pipeline_mode = #tpu.pipeline_mode<synchronous>, transform_indices = @transform_6, window_bounds = array<i64: 1, 64>}, {pipeline_mode = #tpu.pipeline_mode<synchronous>, transform_indices = @transform_7, window_bounds = array<i64: 64, 128>}, {pipeline_mode = #tpu.pipeline_mode<synchronous>, transform_indices = @transform_8, window_bounds = array<i64: 1, 128>}, {transform_indices = @transform_9, window_bounds = array<i64: 2, 128>}]} {
    %c0 = arith.constant 0 : index
    %c0_0 = arith.constant 0 : index
    %0 = vector.load %arg1[%c0, %c0_0] : memref<2x32xf32, #tpu.memory_space<vmem>>, vector<2x32xf32>
    %1 = arith.truncf %0 : vector<2x32xf32> to vector<2x32xbf16>
    %c0_1 = arith.constant 0 : index
    %c0_2 = arith.constant 0 : index
    %2 = vector.load %arg2[%c0_1, %c0_2] : memref<32x256xbf16, #tpu.memory_space<vmem>>, vector<32x256xbf16>
    %cst = arith.constant dense<0.000000e+00> : vector<2x256xf32>
    %3 = tpu.matmul %1, %2, %cst {dimension_numbers = #tpu.dot_dimension_numbers<[1], [0], [0], [1], [0, 0, 1, 1], [], []>} : vector<2x32xbf16>, vector<32x256xbf16>, vector<2x256xf32> -> vector<2x256xf32>
    %c0_3 = arith.constant 0 : index
    %c0_4 = arith.constant 0 : index
    %4 = vector.load %arg3[%c0_3, %c0_4] : memref<1x256xf32, #tpu.memory_space<vmem>>, vector<1x256xf32>
    %5 = vector.broadcast %4 : vector<1x256xf32> to vector<2x256xf32>
    %6 = arith.addf %3, %5 : vector<2x256xf32>
    %cst_5 = arith.constant 0.000000e+00 : f32
    %7 = vector.broadcast %cst_5 : f32 to vector<2x256xf32>
    %8 = arith.maximumf %6, %7 : vector<2x256xf32>
    %9 = arith.truncf %8 : vector<2x256xf32> to vector<2x256xbf16>
    %c0_6 = arith.constant 0 : index
    %c0_7 = arith.constant 0 : index
    %10 = vector.load %arg4[%c0_6, %c0_7] : memref<256x128xbf16, #tpu.memory_space<vmem>>, vector<256x128xbf16>
    %cst_8 = arith.constant dense<0.000000e+00> : vector<2x128xf32>
    %11 = tpu.matmul %9, %10, %cst_8 {dimension_numbers = #tpu.dot_dimension_numbers<[1], [0], [0], [1], [0, 0, 1, 1], [], []>} : vector<2x256xbf16>, vector<256x128xbf16>, vector<2x128xf32> -> vector<2x128xf32>
    %c0_9 = arith.constant 0 : index
    %c0_10 = arith.constant 0 : index
    %12 = vector.load %arg5[%c0_9, %c0_10] : memref<1x128xf32, #tpu.memory_space<vmem>>, vector<1x128xf32>
    %13 = vector.broadcast %12 : vector<1x128xf32> to vector<2x128xf32>
    %14 = arith.addf %11, %13 : vector<2x128xf32>
    %cst_11 = arith.constant 0.000000e+00 : f32
    %15 = vector.broadcast %cst_11 : f32 to vector<2x128xf32>
    %16 = arith.maximumf %14, %15 : vector<2x128xf32>
    %17 = arith.truncf %16 : vector<2x128xf32> to vector<2x128xbf16>
    %c0_12 = arith.constant 0 : index
    %c0_13 = arith.constant 0 : index
    %18 = vector.load %arg6[%c0_12, %c0_13] : memref<128x64xbf16, #tpu.memory_space<vmem>>, vector<128x64xbf16>
    %cst_14 = arith.constant dense<0.000000e+00> : vector<2x64xf32>
    %19 = tpu.matmul %17, %18, %cst_14 {dimension_numbers = #tpu.dot_dimension_numbers<[1], [0], [0], [1], [0, 0, 1, 1], [], []>} : vector<2x128xbf16>, vector<128x64xbf16>, vector<2x64xf32> -> vector<2x64xf32>
    %c0_15 = arith.constant 0 : index
    %c0_16 = arith.constant 0 : index
    %20 = vector.load %arg7[%c0_15, %c0_16] : memref<1x64xf32, #tpu.memory_space<vmem>>, vector<1x64xf32>
    %21 = vector.broadcast %20 : vector<1x64xf32> to vector<2x64xf32>
    %22 = arith.addf %19, %21 : vector<2x64xf32>
    %cst_17 = arith.constant 0.000000e+00 : f32
    %23 = vector.broadcast %cst_17 : f32 to vector<2x64xf32>
    %24 = arith.maximumf %22, %23 : vector<2x64xf32>
    %25 = arith.truncf %24 : vector<2x64xf32> to vector<2x64xbf16>
    %c0_18 = arith.constant 0 : index
    %c0_19 = arith.constant 0 : index
    %26 = vector.load %arg8[%c0_18, %c0_19] : memref<64x128xbf16, #tpu.memory_space<vmem>>, vector<64x128xbf16>
    %cst_20 = arith.constant dense<0.000000e+00> : vector<2x128xf32>
    %27 = tpu.matmul %25, %26, %cst_20 {dimension_numbers = #tpu.dot_dimension_numbers<[1], [0], [0], [1], [0, 0, 1, 1], [], []>} : vector<2x64xbf16>, vector<64x128xbf16>, vector<2x128xf32> -> vector<2x128xf32>
    %c0_21 = arith.constant 0 : index
    %c0_22 = arith.constant 0 : index
    %28 = vector.load %arg9[%c0_21, %c0_22] : memref<1x128xf32, #tpu.memory_space<vmem>>, vector<1x128xf32>
    %29 = vector.broadcast %28 : vector<1x128xf32> to vector<2x128xf32>
    %30 = arith.addf %27, %29 : vector<2x128xf32>
    %31 = arith.truncf %30 : vector<2x128xf32> to vector<2x128xbf16>
    %c0_23 = arith.constant 0 : index
    %c0_24 = arith.constant 0 : index
    %32 = vector.load %arg10[%c0_23, %c0_24] : memref<2x128xbf16, #tpu.memory_space<vmem>>, vector<2x128xbf16>
    tpu.vector_store %arg10[%c0_23, %c0_24], %31 {strides = array<i32>} : memref<2x128xbf16, #tpu.memory_space<vmem>>, vector<2x128xbf16>,
    return
  }
  func.func @transform_0(%arg0: i32) -> (i32, i32) {
    %c0_i32 = arith.constant 0 : i32
    %c0_i32_0 = arith.constant 0 : i32
    return %arg0, %c0_i32 : i32, i32
  }
  func.func @transform_1(%arg0: i32) -> (i32, i32) {
    %c0_i32 = arith.constant 0 : i32
    %c0_i32_0 = arith.constant 0 : i32
    %c0_i32_1 = arith.constant 0 : i32
    return %c0_i32, %c0_i32_0 : i32, i32
  }
  func.func @transform_2(%arg0: i32) -> (i32, i32) {
    %c0_i32 = arith.constant 0 : i32
    %c0_i32_0 = arith.constant 0 : i32
    %c0_i32_1 = arith.constant 0 : i32
    return %c0_i32, %c0_i32_0 : i32, i32
  }
  func.func @transform_3(%arg0: i32) -> (i32, i32) {
    %c0_i32 = arith.constant 0 : i32
    %c0_i32_0 = arith.constant 0 : i32
    %c0_i32_1 = arith.constant 0 : i32
    return %c0_i32, %c0_i32_0 : i32, i32
  }
  func.func @transform_4(%arg0: i32) -> (i32, i32) {
    %c0_i32 = arith.constant 0 : i32
    %c0_i32_0 = arith.constant 0 : i32
    %c0_i32_1 = arith.constant 0 : i32
    return %c0_i32, %c0_i32_0 : i32, i32
  }
  func.func @transform_5(%arg0: i32) -> (i32, i32) {
    %c0_i32 = arith.constant 0 : i32
    %c0_i32_0 = arith.constant 0 : i32
    %c0_i32_1 = arith.constant 0 : i32
    return %c0_i32, %c0_i32_0 : i32, i32
  }
  func.func @transform_6(%arg0: i32) -> (i32, i32) {
    %c0_i32 = arith.constant 0 : i32
    %c0_i32_0 = arith.constant 0 : i32
    %c0_i32_1 = arith.constant 0 : i32
    return %c0_i32, %c0_i32_0 : i32, i32
  }
  func.func @transform_7(%arg0: i32) -> (i32, i32) {
    %c0_i32 = arith.constant 0 : i32
    %c0_i32_0 = arith.constant 0 : i32
    %c0_i32_1 = arith.constant 0 : i32
    return %c0_i32, %c0_i32_0 : i32, i32
  }
  func.func @transform_8(%arg0: i32) -> (i32, i32) {
    %c0_i32 = arith.constant 0 : i32
    %c0_i32_0 = arith.constant 0 : i32
    %c0_i32_1 = arith.constant 0 : i32
    return %c0_i32, %c0_i32_0 : i32, i32
  }
  func.func @transform_9(%arg0: i32) -> (i32, i32) {
    %c0_i32 = arith.constant 0 : i32
    %c0_i32_0 = arith.constant 0 : i32
    return %arg0, %c0_i32 : i32, i32
  }
}

module attributes {stable_mosaic.version = 11 : i64} {
  func.func @mlp_kernel(%arg0: i32, %arg1: memref<2x32xf32, #tpu.memory_space<vmem>>, %arg2: memref<32x256xbf16, #tpu.memory_space<vmem>>, %arg3: memref<1x256xf32, #tpu.memory_space<vmem>>, %arg4: memref<256x128xbf16, #tpu.memory_space<vmem>>, %arg5: memref<1x128xf32, #tpu.memory_space<vmem>>, %arg6: memref<128x64xbf16, #tpu.memory_space<vmem>>, %arg7: memref<1x64xf32, #tpu.memory_space<vmem>>, %arg8: memref<64x128xbf16, #tpu.memory_space<vmem>>, %arg9: memref<1x128xf32, #tpu.memory_space<vmem>>, %arg10: memref<2x128xbf16, #tpu.memory_space<vmem>>) attributes {dimension_semantics = [#tpu.dimension_semantics<parallel>], iteration_bounds = array<i64: 1>, scalar_prefetch = 0 : i64, scratch_operands = 0 : i64, tpu.core_type = #tpu.core_type<tc>, window_params = [{transform_indices = @transform_0, window_bounds = array<i64: 2, 32>}, {pipeline_mode = #tpu.pipeline_mode<synchronous>, transform_indices = @transform_1, window_bounds = array<i64: 32, 256>}, {pipeline_mode = #tpu.pipeline_mode<synchronous>, transform_indices = @transform_2, window_bounds = array<i64: 1, 256>}, {pipeline_mode = #tpu.pipeline_mode<synchronous>, transform_indices = @transform_3, window_bounds = array<i64: 256, 128>}, {pipeline_mode = #tpu.pipeline_mode<synchronous>, transform_indices = @transform_4, window_bounds = array<i64: 1, 128>}, {pipeline_mode = #tpu.pipeline_mode<synchronous>, transform_indices = @transform_5, window_bounds = array<i64: 128, 64>}, {pipeline_mode = #tpu.pipeline_mode<synchronous>, transform_indices = @transform_6, window_bounds = array<i64: 1, 64>}, {pipeline_mode = #tpu.pipeline_mode<synchronous>, transform_indices = @transform_7, window_bounds = array<i64: 64, 128>}, {pipeline_mode = #tpu.pipeline_mode<synchronous>, transform_indices = @transform_8, window_bounds = array<i64: 1, 128>}, {transform_indices = @transform_9, window_bounds = array<i64: 2, 128>}]} {
    %c0 = arith.constant 0 : index
    %c0_0 = arith.constant 0 : index
    %0 = vector.load %arg1[%c0, %c0_0] : memref<2x32xf32, #tpu.memory_space<vmem>>, vector<2x32xf32>
    %1 = arith.truncf %0 : vector<2x32xf32> to vector<2x32xbf16>
    %c0_1 = arith.constant 0 : index
    %c0_2 = arith.constant 0 : index
    %2 = vector.load %arg2[%c0_1, %c0_2] : memref<32x256xbf16, #tpu.memory_space<vmem>>, vector<32x256xbf16>
    %cst = arith.constant dense<0.000000e+00> : vector<2x256xf32>
    %3 = tpu.matmul %1, %2, %cst {dimension_numbers = #tpu.dot_dimension_numbers<[1], [0], [0], [1], [0, 0, 1, 1], [], []>} : vector<2x32xbf16>, vector<32x256xbf16>, vector<2x256xf32> -> vector<2x256xf32>
    %c0_3 = arith.constant 0 : index
    %c0_4 = arith.constant 0 : index
    %4 = vector.load %arg3[%c0_3, %c0_4] : memref<1x256xf32, #tpu.memory_space<vmem>>, vector<1x256xf32>
    %5 = vector.broadcast %4 : vector<1x256xf32> to vector<2x256xf32>
    %6 = arith.addf %3, %5 : vector<2x256xf32>
    %cst_5 = arith.constant 0.000000e+00 : f32
    %7 = vector.broadcast %cst_5 : f32 to vector<2x256xf32>
    %8 = arith.maximumf %6, %7 : vector<2x256xf32>
    %9 = arith.truncf %8 : vector<2x256xf32> to vector<2x256xbf16>
    %c0_6 = arith.constant 0 : index
    %c0_7 = arith.constant 0 : index
    %10 = vector.load %arg4[%c0_6, %c0_7] : memref<256x128xbf16, #tpu.memory_space<vmem>>, vector<256x128xbf16>
    %cst_8 = arith.constant dense<0.000000e+00> : vector<2x128xf32>
    %11 = tpu.matmul %9, %10, %cst_8 {dimension_numbers = #tpu.dot_dimension_numbers<[1], [0], [0], [1], [0, 0, 1, 1], [], []>} : vector<2x256xbf16>, vector<256x128xbf16>, vector<2x128xf32> -> vector<2x128xf32>
    %c0_9 = arith.constant 0 : index
    %c0_10 = arith.constant 0 : index
    %12 = vector.load %arg5[%c0_9, %c0_10] : memref<1x128xf32, #tpu.memory_space<vmem>>, vector<1x128xf32>
    %13 = vector.broadcast %12 : vector<1x128xf32> to vector<2x128xf32>
    %14 = arith.addf %11, %13 : vector<2x128xf32>
    %cst_11 = arith.constant 0.000000e+00 : f32
    %15 = vector.broadcast %cst_11 : f32 to vector<2x128xf32>
    %16 = arith.maximumf %14, %15 : vector<2x128xf32>
    %17 = arith.truncf %16 : vector<2x128xf32> to vector<2x128xbf16>
    %c0_12 = arith.constant 0 : index
    %c0_13 = arith.constant 0 : index
    %18 = vector.load %arg6[%c0_12, %c0_13] : memref<128x64xbf16, #tpu.memory_space<vmem>>, vector<128x64xbf16>
    %cst_14 = arith.constant dense<0.000000e+00> : vector<2x64xf32>
    %19 = tpu.matmul %17, %18, %cst_14 {dimension_numbers = #tpu.dot_dimension_numbers<[1], [0], [0], [1], [0, 0, 1, 1], [], []>} : vector<2x128xbf16>, vector<128x64xbf16>, vector<2x64xf32> -> vector<2x64xf32>
    %c0_15 = arith.constant 0 : index
    %c0_16 = arith.constant 0 : index
    %20 = vector.load %arg7[%c0_15, %c0_16] : memref<1x64xf32, #tpu.memory_space<vmem>>, vector<1x64xf32>
    %21 = vector.broadcast %20 : vector<1x64xf32> to vector<2x64xf32>
    %22 = arith.addf %19, %21 : vector<2x64xf32>
    %cst_17 = arith.constant 0.000000e+00 : f32
    %23 = vector.broadcast %cst_17 : f32 to vector<2x64xf32>
    %24 = arith.maximumf %22, %23 : vector<2x64xf32>
    %25 = arith.truncf %24 : vector<2x64xf32> to vector<2x64xbf16>
    %c0_18 = arith.constant 0 : index
    %c0_19 = arith.constant 0 : index
    %26 = vector.load %arg8[%c0_18, %c0_19] : memref<64x128xbf16, #tpu.memory_space<vmem>>, vector<64x128xbf16>
    %cst_20 = arith.constant dense<0.000000e+00> : vector<2x128xf32>
    %27 = tpu.matmul %25, %26, %cst_20 {dimension_numbers = #tpu.dot_dimension_numbers<[1], [0], [0], [1], [0, 0, 1, 1], [], []>} : vector<2x64xbf16>, vector<64x128xbf16>, vector<2x128xf32> -> vector<2x128xf32>
    %c0_21 = arith.constant 0 : index
    %c0_22 = arith.constant 0 : index
    %28 = vector.load %arg9[%c0_21, %c0_22] : memref<1x128xf32, #tpu.memory_space<vmem>>, vector<1x128xf32>
    %29 = vector.broadcast %28 : vector<1x128xf32> to vector<2x128xf32>
    %30 = arith.addf %27, %29 : vector<2x128xf32>
    %31 = arith.truncf %30 : vector<2x128xf32> to vector<2x128xbf16>
    %c0_23 = arith.constant 0 : index
    %c0_24 = arith.constant 0 : index
    %32 = vector.load %arg10[%c0_23, %c0_24] : memref<2x128xbf16, #tpu.memory_space<vmem>>, vector<2x128xbf16>
    tpu.vector_store %arg10[%c0_23, %c0_24], %31 {strides = array<i32>} : memref<2x128xbf16, #tpu.memory_space<vmem>>, vector<2x128xbf16>,
    return
  }
  func.func @transform_0(%arg0: i32) -> (i32, i32) {
    %c0_i32 = arith.constant 0 : i32
    %c0_i32_0 = arith.constant 0 : i32
    return %arg0, %c0_i32 : i32, i32
  }
  func.func @transform_1(%arg0: i32) -> (i32, i32) {
    %c0_i32 = arith.constant 0 : i32
    %c0_i32_0 = arith.constant 0 : i32
    %c0_i32_1 = arith.constant 0 : i32
    return %c0_i32, %c0_i32_0 : i32, i32
  }
  func.func @transform_2(%arg0: i32) -> (i32, i32) {
    %c0_i32 = arith.constant 0 : i32
    %c0_i32_0 = arith.constant 0 : i32
    %c0_i32_1 = arith.constant 0 : i32
    return %c0_i32, %c0_i32_0 : i32, i32
  }
  func.func @transform_3(%arg0: i32) -> (i32, i32) {
    %c0_i32 = arith.constant 0 : i32
    %c0_i32_0 = arith.constant 0 : i32
    %c0_i32_1 = arith.constant 0 : i32
    return %c0_i32, %c0_i32_0 : i32, i32
  }
  func.func @transform_4(%arg0: i32) -> (i32, i32) {
    %c0_i32 = arith.constant 0 : i32
    %c0_i32_0 = arith.constant 0 : i32
    %c0_i32_1 = arith.constant 0 : i32
    return %c0_i32, %c0_i32_0 : i32, i32
  }
  func.func @transform_5(%arg0: i32) -> (i32, i32) {
    %c0_i32 = arith.constant 0 : i32
    %c0_i32_0 = arith.constant 0 : i32
    %c0_i32_1 = arith.constant 0 : i32
    return %c0_i32, %c0_i32_0 : i32, i32
  }
  func.func @transform_6(%arg0: i32) -> (i32, i32) {
    %c0_i32 = arith.constant 0 : i32
    %c0_i32_0 = arith.constant 0 : i32
    %c0_i32_1 = arith.constant 0 : i32
    return %c0_i32, %c0_i32_0 : i32, i32
  }
  func.func @transform_7(%arg0: i32) -> (i32, i32) {
    %c0_i32 = arith.constant 0 : i32
    %c0_i32_0 = arith.constant 0 : i32
    %c0_i32_1 = arith.constant 0 : i32
    return %c0_i32, %c0_i32_0 : i32, i32
  }
  func.func @transform_8(%arg0: i32) -> (i32, i32) {
    %c0_i32 = arith.constant 0 : i32
    %c0_i32_0 = arith.constant 0 : i32
    %c0_i32_1 = arith.constant 0 : i32
    return %c0_i32, %c0_i32_0 : i32, i32
  }
  func.func @transform_9(%arg0: i32) -> (i32, i32) {
    %c0_i32 = arith.constant 0 : i32
    %c0_i32_0 = arith.constant 0 : i32
    return %arg0, %c0_i32 : i32, i32
  }
}

</mosaic_0001>

<bundles_post_ra>
// kernel: tpu_custom_call.1
= control target key start
LH: loop header
LB: loop body
LE: loop exit
PB: predicated region body
PF: predicated region fallthrough
CT: control target
= control target key end

     0   :  { %14 = vsyncpa [#allocation3], 0  ;;  %s877_s0 = inlined_call_operand.vmem [shape: f32[2,32], index: 0, kind: input, shape index: {}]   ;;  %s878_s1 = inlined_call_operand.vmem [shape: bf16[32,256], index: 1, kind: input, shape index: {}]   ;;  %s879_s2 = inlined_call_operand.vmem [shape: f32[1,256], index: 2, kind: input, shape index: {}]   ;;  %s880_s3 = inlined_call_operand.hbm [shape: bf16[256,128], index: 3, kind: input, shape index: {}]   ;;  %s881_s4 = inlined_call_operand.vmem [shape: f32[1,128], index: 4, kind: input, shape index: {}]   ;;  %s882_s5 = inlined_call_operand.vmem [shape: bf16[128,64], index: 5, kind: input, shape index: {}]   ;;  %s883_s6 = inlined_call_operand.vmem [shape: f32[1,64], index: 6, kind: input, shape index: {}]   ;;  %s884_s7 = inlined_call_operand.vmem [shape: bf16[64,128], index: 7, kind: input, shape index: {}]   ;;  %s885_s8 = inlined_call_operand.vmem [shape: f32[1,128], index: 8, kind: input, shape index: {}]   ;;  %s886_s9 = inlined_call_operand.hbm [shape: bf16[2,128], index: 9, kind: output, shape index: {}]  }
   0x1   :  { %15 = vsyncpa [#allocation4], 0  ;;  %s719_s30 = smov [#allocation2]   ;;  %s671_s13 = scalar_lea.hbm %s880_s3, 2048 }
   0x2   :  { %s27_s10 = sshll.u32 %s719_s30, 4  ;;  %p672_p0 = scmp.ne.s32.totalorder %s880_s3, %s671_s13  ;;  %s28_s10 = int_to_ptr.vmem [resolvable:$true] %s27_s10 }
   0x3   :  { %p675_p1 = scmp.lt.u32.totalorder %s671_s13, %s880_s3 }
   0x5   :  { %p677_p2 = pnand %p675_p1, %p672_p0 }
   0x7   :  { %680 = shalt.err (!%p677_p2)
}
   0x8   :  { %s681_s18 = scalar_lea.vmem %s28_s10, 2048  ;;  %p686_p4 = scmp.lt.s32.totalorder %s28_s10, %s28_s10 }
   0x9   :  { %p682_p3 = scmp.ne.s32.totalorder %s28_s10, %s681_s18  ;;  %p687_p5 = scmp.lt.s32.totalorder %s681_s18, %s681_s18 }
   0xb   :  { %p688_p6 = por %p687_p5, %p686_p4 }
   0xd   :  { %p689_p7 = pnand %p688_p6, %p682_p3 }
   0xf   :  { %692 = shalt.err (!%p689_p7)
}
  0x10   :  { %s720_s19 = smov 64   ;;  %s721_s20 = smov 4  }
  0x11   :  { %33 = dma.hbm_to_vmem [thread:$0]  %s880_s3, 2048, %s28_s10, [#allocation3], %s720_s19, %s720_s19, %s721_s20  }
  0x12   :  { %715 = dma.done.wait [#allocation3], 2048  }
  0x13   :  { %716 = vsyncadd [#allocation3], 4294965248  ;;  %v722_v0 = vmov 0   ;;  %v637_v1 = vld [vmem:[%s878_s1 + $0x4] ss:$8 sps:$4 sm:$0xff]   ;;  %vm86_vm0 = vcmask 261120   ;;  %v56_v30 = vlaneseq }
  0x14   :  { %122 = vmatprep.mubr.bf16.mxu0 %v722_v0  ;;  %v639_v2 = vld [vmem:[%s878_s1] ss:$8 sps:$4 sm:$0xff]   ;;  %90 = vmatprep.subr.bf16.mxu0 %v637_v1  ;;  %v640_v3 = vld [vmem:[%s878_s1 + $0x14] ss:$8 sps:$4 sm:$0xff]   ;;  %v642_v4 = vld [vmem:[%s878_s1 + $0x10] ss:$8 sps:$4 sm:$0xff]  }
  0x15   :  { %v48_v5 = vld [vmem:[%s877_s0] sm:$0x3]  ;;  %91 = vmatpush1.bf16.msra.mxu0 %v639_v2  ;;  %v645_v8 = vld [vmem:[#allocation2 + $0x48] sm:$0xff]   ;;  %v647_v11 = vld [vmem:[#allocation2 + $0x50] sm:$0xff]   ;;  %v723_v24 = vmov 0.0   ;;  %v57_v31 = vshrl.u32 %v56_v30, 7 }
  0x16   :  { %v643_v6 = vld [vmem:[#allocation2 + $0x40] sm:$0xff]   ;;  %92 = vmatprep.subr.bf16.mxu0 %v640_v3  ;;  %v49_v9 = vpack.c.bf16 %v48_v5, %v48_v5  ;;  %v646_v10 = vld [vmem:[#allocation2 + $0x8] sm:$0xff]   ;;  %v648_v12 = vld [vmem:[#allocation2 + $0x10] sm:$0xff]   ;;  %vm724_vm1 = vmmov 0   ;;  %vm464_vm2 = vcmask 523264  }
  0x17   :  { %v644_v7 = vld [vmem:[#allocation2] sm:$0xff]   ;;  %562 = vmatprep.subr.bf16.mxu1 %v643_v6  ;;  %v649_v13 = vld [vmem:[#allocation2 + $0x58] sm:$0xff]   ;;  %v653_v17 = vld [vmem:[#allocation2 + $0x68] sm:$0xff]   ;;  %v58_v32 = vsub.s32 0, %v57_v31  ;;  %v62_v34 = vsub.s32 1, %v57_v31 }
  0x18   :  { %563 = vmatpush3.bf16.msra.mxu1 %v644_v7  ;;  %v650_v14 = vld [vmem:[#allocation2 + $0x18] sm:$0xff]   ;;  %v651_v15 = vld [vmem:[#allocation2 + $0x60] sm:$0xff]   ;;  %v654_v18 = vld [vmem:[#allocation2 + $0x28] sm:$0xff]  }
  0x19   :  { %93 = vmatpush1.bf16.msra.mxu0 %v642_v4  ;;  %564 = vmatprep.subr.bf16.mxu1 %v645_v8  ;;  %v652_v16 = vld [vmem:[#allocation2 + $0x20] sm:$0xff]   ;;  %v655_v19 = vld [vmem:[#allocation2 + $0x70] sm:$0xff]   ;;  %v657_v21 = vld [vmem:[#allocation2 + $0x78] sm:$0xff]  }
  0x1a   :  { %v656_v20 = vld [vmem:[#allocation2 + $0x30] sm:$0xff]   ;;  %v658_v22 = vld [vmem:[#allocation2 + $0x38] sm:$0xff]   ;;  %v659_v23 = vld [vmem:[%s882_s5] sm:$0xff]   ;;  %598 = vmatprep.subr.bf16.mxu0 %v723_v24 }
  0x1b   :  { %v660_v25 = vld [vmem:[%s882_s5 + $0x8] sm:$0xff]   ;;  %v661_v26 = vld [vmem:[%s882_s5 + $0x10] sm:$0xff]   ;;  %v662_v27 = vld [vmem:[%s882_s5 + $0x18] sm:$0xff]  }
  0x1c   :  { %529 = vmatmul.mubr.msk.bf16.vlgmr.msra.gmra.mrb[0].mxu0 %vm86_vm0, %v49_v9  ;;  %565 = vmatpush3.bf16.msra.mxu1 %v646_v10  ;;  %v663_v28 = vld [vmem:[%s882_s5 + $0x20] sm:$0xff]   ;;  %v664_v29 = vld [vmem:[%s882_s5 + $0x28] sm:$0xff]   ;;  %v665_v47 = vld [vmem:[%s882_s5 + $0x30] sm:$0xff]  }
  0x1d   :  { %566 = vmatprep.subr.bf16.mxu1 %v647_v11  ;;  %599 = vmatpush3.bf16.msra.mxu0 %v659_v23  ;;  %v54_v33 = vld [vmem:[%s879_s2] sm:$0x3]  ;;  %v666_v48 = vld [vmem:[%s882_s5 + $0x38] sm:$0xff]   ;;  %v668_v50 = vld [vmem:[%s884_s7 + $0x8] sm:$0xff]  }
  0x1e   :  { %600 = vmatprep.subr.bf16.mxu0 %v723_v24  ;;  %v59_v35 = vrot.slane %v54_v33, %v58_v32  ;;  %v63_v36 = vrot.slane %v54_v33, %v62_v34  ;;  %614 = vmatprep.mubr.msk.bf16.mxu0 %vm724_vm1, %v723_v24  ;;  %v667_v49 = vld [vmem:[%s884_s7] sm:$0xff]   ;;  %v669_v60 = vld [vmem:[%s884_s7 + $0x10] sm:$0xff]   ;;  %v670_v61 = vld [vmem:[%s884_s7 + $0x18] sm:$0xff]   ;;  %s725_s7 = smov [#allocation5]  }
  0x1f   :  { %v530_v52 = vld [vmem:[%s881_s4] ss:$0 sm:$0xff]  ;;  %s516_s14 = sshll.u32 %s725_s7, 4  ;;  %s517_s14 = int_to_ptr.vmem [resolvable:$true] %s516_s14 }
  0x20   :  { %567 = vmatpush3.bf16.msra.mxu1 %v648_v12  ;;  %v547_v62 = vld [vmem:[%s883_s6] ss:$0 sm:$0xff]  ;;  %s693_s6 = scalar_lea.vmem %s517_s14, 16  ;;  %s697_s15 = scalar_lea.vmem %s517_s14, 32 }
  0x21   :  { %568 = vmatprep.subr.bf16.mxu1 %v649_v13  ;;  %601 = vmatpush3.bf16.msra.mxu0 %v660_v25  ;;  %v556_v6 = vld [vmem:[%s885_s8] ss:$0 sm:$0xff]  ;;  %p694_p8 = scmp.ne.s32.totalorder %s517_s14, %s693_s6  ;;  %p698_p9 = scmp.lt.s32.totalorder %s517_s14, %s517_s14 }
  0x22   :  { %602 = vmatprep.subr.bf16.mxu0 %v723_v24  ;;  %p699_p10 = scmp.lt.s32.totalorder %s697_s15, %s693_s6 }
  0x24   :  { %569 = vmatpush3.bf16.msra.mxu1 %v650_v14  ;;  %p700_p11 = por %p699_p10, %p698_p9 }
  0x25   :  { %570 = vmatprep.subr.bf16.mxu1 %v651_v15  ;;  %603 = vmatpush3.bf16.msra.mxu0 %v661_v26 }
  0x26   :  { %604 = vmatprep.subr.bf16.mxu0 %v723_v24  ;;  %p701_p12 = pnand %p700_p11, %p694_p8 }
  0x28   :  { %571 = vmatpush3.bf16.msra.mxu1 %v652_v16 }
  0x29   :  { %572 = vmatprep.subr.bf16.mxu1 %v653_v17  ;;  %605 = vmatpush3.bf16.msra.mxu0 %v662_v27 }
  0x2a   :  { %606 = vmatprep.subr.bf16.mxu0 %v723_v24 }
  0x2c   :  { %573 = vmatpush3.bf16.msra.mxu1 %v654_v18 }
  0x2d   :  { %574 = vmatprep.subr.bf16.mxu1 %v655_v19  ;;  %607 = vmatpush3.bf16.msra.mxu0 %v663_v28 }
  0x2e   :  { %608 = vmatprep.subr.bf16.mxu0 %v723_v24 }
  0x30   :  { %575 = vmatpush3.bf16.msra.mxu1 %v656_v20 }
  0x31   :  { %576 = vmatprep.subr.bf16.mxu1 %v657_v21  ;;  %609 = vmatpush3.bf16.msra.mxu0 %v664_v29 }
  0x32   :  { %610 = vmatprep.subr.bf16.mxu0 %v723_v24 }
  0x34   :  { %577 = vmatpush3.bf16.msra.mxu1 %v658_v22 }
  0x35   :  { %618 = vmatprep.subr.bf16.mxu1 %v723_v24  ;;  %611 = vmatpush3.bf16.msra.mxu0 %v665_v47 }
  0x36   :  { %612 = vmatprep.subr.bf16.mxu0 %v723_v24 }
  0x39   :  { %613 = vmatpush3.bf16.msra.mxu0 %v666_v48 }
  0xef   :  { %v124_v37 = vpop.f32.mrb[0].mxu0 }
  0xf0   :  { %v125_v38 = vadd.f32 %v124_v37, %v59_v35  ;;  %v126_v39 = vpop.f32.mrb[1].mxu0 }
  0xf1   :  { %v127_v40 = vadd.f32 %v126_v39, %v63_v36  ;;  %v128_v41 = vpop.f32.mrb[2].mxu0 }
  0xf2   :  { %v131_v42 = vmax.f32 %v125_v38, 0.0  ;;  %v129_v43 = vpop.f32.mrb[3].mxu0 }
  0xf3   :  { %v132_v44 = vmax.f32 %v127_v40, 0.0 }
  0xf4   :  { %v133_v46 = vpack.c.bf16 %v131_v42, %v131_v42 }
  0xf5   :  { %v134_v45 = vpack.c.bf16 %v132_v44, %v132_v44 }
  0xf7   :  { %302 = vmatprep.mubr.bf16.mxu1 %v134_v45 }
  0xf8   :  { %303 = vmatmul.mubr.bf16.vlgmr.msra.gmra.mrb[0].mxu1 %v133_v46 }
  0xf9   :  { %626 = vmatprep.mubr.msk.bf16.mxu1 %vm724_vm1, %v723_v24  ;;  %619 = vmatpush3.bf16.msra.mxu1 %v667_v49 }
  0xfa   :  { %620 = vmatprep.subr.bf16.mxu1 %v723_v24 }
  0xfd   :  { %621 = vmatpush3.bf16.msra.mxu1 %v668_v50 }
  0xfe   :  { %622 = vmatprep.subr.bf16.mxu1 %v723_v24 }
 0x101   :  { %623 = vmatpush3.bf16.msra.mxu1 %v669_v60 }
 0x102   :  { %624 = vmatprep.subr.bf16.mxu1 %v723_v24 }
 0x105   :  { %625 = vmatpush3.bf16.msra.mxu1 %v670_v61 }
 0x1cb   :  { %v578_v51 = vpop.f32.mrb[0].mxu1 }
 0x1cc   :  { %v579_v53 = vpop.f32.mrb[1].mxu1 }
 0x1cd   :  { %v580_v54 = vadd.f32 %v579_v53, %v578_v51  ;;  %v581_v55 = vpop.f32.mrb[2].mxu1 }
 0x1ce   :  { %v582_v56 = vpop.f32.mrb[3].mxu1 }
 0x1cf   :  { %v305_v57 = vadd.f32 %v580_v54, %v530_v52 }
 0x1d1   :  { %v310_v58 = vmax.f32 %v305_v57, 0.0 }
 0x1d3   :  { %v311_v59 = vpack.c.bf16 %v310_v58, %v310_v58 }
 0x1d5   :  { %615 = vmatmul.mubr.bf16.vlgmr.msra.gmra.mrb[4].mxu0 %v311_v59 }
 0x2a8   :  { %v417_v63 = vpop.f32.mrb[4].mxu0 }
 0x2a9   :  { %v418_v0 = vadd.f32 %v547_v62, %v417_v63  ;;  %v616_v1 = vpop.f32.mrb[5].mxu0 }
 0x2aa   :  { %v420_v2 = vpop.f32.mrb[6].mxu0 }
 0x2ab   :  { %v423_v3 = vmax.f32 %v418_v0, 0.0  ;;  %v617_v4 = vpop.f32.mrb[7].mxu0 }
 0x2ad   :  { %v424_v5 = vpack.c.bf16 %v423_v3, %v423_v3 }
 0x2af   :  { %627 = vmatmul.mubr.msk.bf16.vlgmr.msra.gmra.mrb[4].mxu1 %vm464_vm2, %v424_v5 }
 0x382   :  { %v502_v7 = vpop.f32.mrb[4].mxu1 }
 0x383   :  { %v503_v8 = vadd.f32 %v556_v6, %v502_v7  ;;  %v628_v9 = vpop.f32.mrb[5].mxu1 }
 0x384   :  { %v505_v10 = vpop.f32.mrb[6].mxu1 }
 0x385   :  { %v508_v11 = vpack.c.bf16 %v503_v8, %v503_v8  ;;  %v629_v12 = vpop.f32.mrb[7].mxu1 }
 0x387   :  { %509 = vst [vmem:[#allocation5] sm:$0x1] %v508_v11 }
 0x388   :  { %704 = shalt.err (!%p701_p12)
}
 0x389   :  { %s705_s17 = scalar_lea.hbm %s886_s9, 16 }
 0x38a   :  { %p706_p13 = scmp.ne.s32.totalorder %s886_s9, %s705_s17  ;;  %p709_p0 = scmp.lt.u32.totalorder %s705_s17, %s886_s9 }
 0x38c   :  { %p711_p1 = pnand %p709_p0, %p706_p13 }
 0x38e   :  { %714 = shalt.err (!%p711_p1)
}
 0x38f   :  { %519 = dma.vmem_to_hbm [thread:$0]  %s517_s14, 16, %s886_s9, [#allocation4]  }
 0x390   :  { %717 = dma.done.wait [#allocation4], 16  }
 0x391   :  { %718 = vsyncadd [#allocation4], 4294967280 }
 0x392   :  { %523 = vsyncpa [#allocation3], 1 }
 0x393   :  { %524 = vsyncpa [#allocation4], 1 }

// kernel: tpu_custom_call.1
= control target key start
LH: loop header
LB: loop body
LE: loop exit
PB: predicated region body
PF: predicated region fallthrough
CT: control target
= control target key end

     0   :  { %14 = vsyncpa [#allocation3], 0  ;;  %s877_s0 = inlined_call_operand.vmem [shape: f32[2,32], index: 0, kind: input, shape index: {}]   ;;  %s878_s1 = inlined_call_operand.vmem [shape: bf16[32,256], index: 1, kind: input, shape index: {}]   ;;  %s879_s2 = inlined_call_operand.vmem [shape: f32[1,256], index: 2, kind: input, shape index: {}]   ;;  %s880_s3 = inlined_call_operand.hbm [shape: bf16[256,128], index: 3, kind: input, shape index: {}]   ;;  %s881_s4 = inlined_call_operand.vmem [shape: f32[1,128], index: 4, kind: input, shape index: {}]   ;;  %s882_s5 = inlined_call_operand.vmem [shape: bf16[128,64], index: 5, kind: input, shape index: {}]   ;;  %s883_s6 = inlined_call_operand.vmem [shape: f32[1,64], index: 6, kind: input, shape index: {}]   ;;  %s884_s7 = inlined_call_operand.vmem [shape: bf16[64,128], index: 7, kind: input, shape index: {}]   ;;  %s885_s8 = inlined_call_operand.vmem [shape: f32[1,128], index: 8, kind: input, shape index: {}]   ;;  %s886_s9 = inlined_call_operand.hbm [shape: bf16[2,128], index: 9, kind: output, shape index: {}]  }
   0x1   :  { %15 = vsyncpa [#allocation4], 0  ;;  %s719_s30 = smov [#allocation2]   ;;  %s671_s13 = scalar_lea.hbm %s880_s3, 2048 }
   0x2   :  { %s27_s10 = sshll.u32 %s719_s30, 4  ;;  %p672_p0 = scmp.ne.s32.totalorder %s880_s3, %s671_s13  ;;  %s28_s10 = int_to_ptr.vmem [resolvable:$true] %s27_s10 }
   0x3   :  { %p675_p1 = scmp.lt.u32.totalorder %s671_s13, %s880_s3 }
   0x5   :  { %p677_p2 = pnand %p675_p1, %p672_p0 }
   0x7   :  { %680 = shalt.err (!%p677_p2)
}
   0x8   :  { %s681_s18 = scalar_lea.vmem %s28_s10, 2048  ;;  %p686_p4 = scmp.lt.s32.totalorder %s28_s10, %s28_s10 }
   0x9   :  { %p682_p3 = scmp.ne.s32.totalorder %s28_s10, %s681_s18  ;;  %p687_p5 = scmp.lt.s32.totalorder %s681_s18, %s681_s18 }
   0xb   :  { %p688_p6 = por %p687_p5, %p686_p4 }
   0xd   :  { %p689_p7 = pnand %p688_p6, %p682_p3 }
   0xf   :  { %692 = shalt.err (!%p689_p7)
}
  0x10   :  { %s720_s19 = smov 64   ;;  %s721_s20 = smov 4  }
  0x11   :  { %33 = dma.hbm_to_vmem [thread:$0]  %s880_s3, 2048, %s28_s10, [#allocation3], %s720_s19, %s720_s19, %s721_s20  }
  0x12   :  { %715 = dma.done.wait [#allocation3], 2048  }
  0x13   :  { %716 = vsyncadd [#allocation3], 4294965248  ;;  %v722_v0 = vmov 0   ;;  %v637_v1 = vld [vmem:[%s878_s1 + $0x4] ss:$8 sps:$4 sm:$0xff]   ;;  %vm86_vm0 = vcmask 261120   ;;  %v56_v30 = vlaneseq }
  0x14   :  { %122 = vmatprep.mubr.bf16.mxu0 %v722_v0  ;;  %v639_v2 = vld [vmem:[%s878_s1] ss:$8 sps:$4 sm:$0xff]   ;;  %90 = vmatprep.subr.bf16.mxu0 %v637_v1  ;;  %v640_v3 = vld [vmem:[%s878_s1 + $0x14] ss:$8 sps:$4 sm:$0xff]   ;;  %v642_v4 = vld [vmem:[%s878_s1 + $0x10] ss:$8 sps:$4 sm:$0xff]  }
  0x15   :  { %v48_v5 = vld [vmem:[%s877_s0] sm:$0x3]  ;;  %91 = vmatpush1.bf16.msra.mxu0 %v639_v2  ;;  %v645_v8 = vld [vmem:[#allocation2 + $0x48] sm:$0xff]   ;;  %v647_v11 = vld [vmem:[#allocation2 + $0x50] sm:$0xff]   ;;  %v723_v24 = vmov 0.0   ;;  %v57_v31 = vshrl.u32 %v56_v30, 7 }
  0x16   :  { %v643_v6 = vld [vmem:[#allocation2 + $0x40] sm:$0xff]   ;;  %92 = vmatprep.subr.bf16.mxu0 %v640_v3  ;;  %v49_v9 = vpack.c.bf16 %v48_v5, %v48_v5  ;;  %v646_v10 = vld [vmem:[#allocation2 + $0x8] sm:$0xff]   ;;  %v648_v12 = vld [vmem:[#allocation2 + $0x10] sm:$0xff]   ;;  %vm724_vm1 = vmmov 0   ;;  %vm464_vm2 = vcmask 523264  }
  0x17   :  { %v644_v7 = vld [vmem:[#allocation2] sm:$0xff]   ;;  %562 = vmatprep.subr.bf16.mxu1 %v643_v6  ;;  %v649_v13 = vld [vmem:[#allocation2 + $0x58] sm:$0xff]   ;;  %v653_v17 = vld [vmem:[#allocation2 + $0x68] sm:$0xff]   ;;  %v58_v32 = vsub.s32 0, %v57_v31  ;;  %v62_v34 = vsub.s32 1, %v57_v31 }
  0x18   :  { %563 = vmatpush3.bf16.msra.mxu1 %v644_v7  ;;  %v650_v14 = vld [vmem:[#allocation2 + $0x18] sm:$0xff]   ;;  %v651_v15 = vld [vmem:[#allocation2 + $0x60] sm:$0xff]   ;;  %v654_v18 = vld [vmem:[#allocation2 + $0x28] sm:$0xff]  }
  0x19   :  { %93 = vmatpush1.bf16.msra.mxu0 %v642_v4  ;;  %564 = vmatprep.subr.bf16.mxu1 %v645_v8  ;;  %v652_v16 = vld [vmem:[#allocation2 + $0x20] sm:$0xff]   ;;  %v655_v19 = vld [vmem:[#allocation2 + $0x70] sm:$0xff]   ;;  %v657_v21 = vld [vmem:[#allocation2 + $0x78] sm:$0xff]  }
  0x1a   :  { %v656_v20 = vld [vmem:[#allocation2 + $0x30] sm:$0xff]   ;;  %v658_v22 = vld [vmem:[#allocation2 + $0x38] sm:$0xff]   ;;  %v659_v23 = vld [vmem:[%s882_s5] sm:$0xff]   ;;  %598 = vmatprep.subr.bf16.mxu0 %v723_v24 }
  0x1b   :  { %v660_v25 = vld [vmem:[%s882_s5 + $0x8] sm:$0xff]   ;;  %v661_v26 = vld [vmem:[%s882_s5 + $0x10] sm:$0xff]   ;;  %v662_v27 = vld [vmem:[%s882_s5 + $0x18] sm:$0xff]  }
  0x1c   :  { %529 = vmatmul.mubr.msk.bf16.vlgmr.msra.gmra.mrb[0].mxu0 %vm86_vm0, %v49_v9  ;;  %565 = vmatpush3.bf16.msra.mxu1 %v646_v10  ;;  %v663_v28 = vld [vmem:[%s882_s5 + $0x20] sm:$0xff]   ;;  %v664_v29 = vld [vmem:[%s882_s5 + $0x28] sm:$0xff]   ;;  %v665_v47 = vld [vmem:[%s882_s5 + $0x30] sm:$0xff]  }
  0x1d   :  { %566 = vmatprep.subr.bf16.mxu1 %v647_v11  ;;  %599 = vmatpush3.bf16.msra.mxu0 %v659_v23  ;;  %v54_v33 = vld [vmem:[%s879_s2] sm:$0x3]  ;;  %v666_v48 = vld [vmem:[%s882_s5 + $0x38] sm:$0xff]   ;;  %v668_v50 = vld [vmem:[%s884_s7 + $0x8] sm:$0xff]  }
  0x1e   :  { %600 = vmatprep.subr.bf16.mxu0 %v723_v24  ;;  %v59_v35 = vrot.slane %v54_v33, %v58_v32  ;;  %v63_v36 = vrot.slane %v54_v33, %v62_v34  ;;  %614 = vmatprep.mubr.msk.bf16.mxu0 %vm724_vm1, %v723_v24  ;;  %v667_v49 = vld [vmem:[%s884_s7] sm:$0xff]   ;;  %v669_v60 = vld [vmem:[%s884_s7 + $0x10] sm:$0xff]   ;;  %v670_v61 = vld [vmem:[%s884_s7 + $0x18] sm:$0xff]   ;;  %s725_s7 = smov [#allocation5]  }
  0x1f   :  { %v530_v52 = vld [vmem:[%s881_s4] ss:$0 sm:$0xff]  ;;  %s516_s14 = sshll.u32 %s725_s7, 4  ;;  %s517_s14 = int_to_ptr.vmem [resolvable:$true] %s516_s14 }
  0x20   :  { %567 = vmatpush3.bf16.msra.mxu1 %v648_v12  ;;  %v547_v62 = vld [vmem:[%s883_s6] ss:$0 sm:$0xff]  ;;  %s693_s6 = scalar_lea.vmem %s517_s14, 16  ;;  %s697_s15 = scalar_lea.vmem %s517_s14, 32 }
  0x21   :  { %568 = vmatprep.subr.bf16.mxu1 %v649_v13  ;;  %601 = vmatpush3.bf16.msra.mxu0 %v660_v25  ;;  %v556_v6 = vld [vmem:[%s885_s8] ss:$0 sm:$0xff]  ;;  %p694_p8 = scmp.ne.s32.totalorder %s517_s14, %s693_s6  ;;  %p698_p9 = scmp.lt.s32.totalorder %s517_s14, %s517_s14 }
  0x22   :  { %602 = vmatprep.subr.bf16.mxu0 %v723_v24  ;;  %p699_p10 = scmp.lt.s32.totalorder %s697_s15, %s693_s6 }
  0x24   :  { %569 = vmatpush3.bf16.msra.mxu1 %v650_v14  ;;  %p700_p11 = por %p699_p10, %p698_p9 }
  0x25   :  { %570 = vmatprep.subr.bf16.mxu1 %v651_v15  ;;  %603 = vmatpush3.bf16.msra.mxu0 %v661_v26 }
  0x26   :  { %604 = vmatprep.subr.bf16.mxu0 %v723_v24  ;;  %p701_p12 = pnand %p700_p11, %p694_p8 }
  0x28   :  { %571 = vmatpush3.bf16.msra.mxu1 %v652_v16 }
  0x29   :  { %572 = vmatprep.subr.bf16.mxu1 %v653_v17  ;;  %605 = vmatpush3.bf16.msra.mxu0 %v662_v27 }
  0x2a   :  { %606 = vmatprep.subr.bf16.mxu0 %v723_v24 }
  0x2c   :  { %573 = vmatpush3.bf16.msra.mxu1 %v654_v18 }
  0x2d   :  { %574 = vmatprep.subr.bf16.mxu1 %v655_v19  ;;  %607 = vmatpush3.bf16.msra.mxu0 %v663_v28 }
  0x2e   :  { %608 = vmatprep.subr.bf16.mxu0 %v723_v24 }
  0x30   :  { %575 = vmatpush3.bf16.msra.mxu1 %v656_v20 }
  0x31   :  { %576 = vmatprep.subr.bf16.mxu1 %v657_v21  ;;  %609 = vmatpush3.bf16.msra.mxu0 %v664_v29 }
  0x32   :  { %610 = vmatprep.subr.bf16.mxu0 %v723_v24 }
  0x34   :  { %577 = vmatpush3.bf16.msra.mxu1 %v658_v22 }
  0x35   :  { %618 = vmatprep.subr.bf16.mxu1 %v723_v24  ;;  %611 = vmatpush3.bf16.msra.mxu0 %v665_v47 }
  0x36   :  { %612 = vmatprep.subr.bf16.mxu0 %v723_v24 }
  0x39   :  { %613 = vmatpush3.bf16.msra.mxu0 %v666_v48 }
  0xef   :  { %v124_v37 = vpop.f32.mrb[0].mxu0 }
  0xf0   :  { %v125_v38 = vadd.f32 %v124_v37, %v59_v35  ;;  %v126_v39 = vpop.f32.mrb[1].mxu0 }
  0xf1   :  { %v127_v40 = vadd.f32 %v126_v39, %v63_v36  ;;  %v128_v41 = vpop.f32.mrb[2].mxu0 }
  0xf2   :  { %v131_v42 = vmax.f32 %v125_v38, 0.0  ;;  %v129_v43 = vpop.f32.mrb[3].mxu0 }
  0xf3   :  { %v132_v44 = vmax.f32 %v127_v40, 0.0 }
  0xf4   :  { %v133_v46 = vpack.c.bf16 %v131_v42, %v131_v42 }
  0xf5   :  { %v134_v45 = vpack.c.bf16 %v132_v44, %v132_v44 }
  0xf7   :  { %302 = vmatprep.mubr.bf16.mxu1 %v134_v45 }
  0xf8   :  { %303 = vmatmul.mubr.bf16.vlgmr.msra.gmra.mrb[0].mxu1 %v133_v46 }
  0xf9   :  { %626 = vmatprep.mubr.msk.bf16.mxu1 %vm724_vm1, %v723_v24  ;;  %619 = vmatpush3.bf16.msra.mxu1 %v667_v49 }
  0xfa   :  { %620 = vmatprep.subr.bf16.mxu1 %v723_v24 }
  0xfd   :  { %621 = vmatpush3.bf16.msra.mxu1 %v668_v50 }
  0xfe   :  { %622 = vmatprep.subr.bf16.mxu1 %v723_v24 }
 0x101   :  { %623 = vmatpush3.bf16.msra.mxu1 %v669_v60 }
 0x102   :  { %624 = vmatprep.subr.bf16.mxu1 %v723_v24 }
 0x105   :  { %625 = vmatpush3.bf16.msra.mxu1 %v670_v61 }
 0x1cb   :  { %v578_v51 = vpop.f32.mrb[0].mxu1 }
 0x1cc   :  { %v579_v53 = vpop.f32.mrb[1].mxu1 }
 0x1cd   :  { %v580_v54 = vadd.f32 %v579_v53, %v578_v51  ;;  %v581_v55 = vpop.f32.mrb[2].mxu1 }
 0x1ce   :  { %v582_v56 = vpop.f32.mrb[3].mxu1 }
 0x1cf   :  { %v305_v57 = vadd.f32 %v580_v54, %v530_v52 }
 0x1d1   :  { %v310_v58 = vmax.f32 %v305_v57, 0.0 }
 0x1d3   :  { %v311_v59 = vpack.c.bf16 %v310_v58, %v310_v58 }
 0x1d5   :  { %615 = vmatmul.mubr.bf16.vlgmr.msra.gmra.mrb[4].mxu0 %v311_v59 }
 0x2a8   :  { %v417_v63 = vpop.f32.mrb[4].mxu0 }
 0x2a9   :  { %v418_v0 = vadd.f32 %v547_v62, %v417_v63  ;;  %v616_v1 = vpop.f32.mrb[5].mxu0 }
 0x2aa   :  { %v420_v2 = vpop.f32.mrb[6].mxu0 }
 0x2ab   :  { %v423_v3 = vmax.f32 %v418_v0, 0.0  ;;  %v617_v4 = vpop.f32.mrb[7].mxu0 }
 0x2ad   :  { %v424_v5 = vpack.c.bf16 %v423_v3, %v423_v3 }
 0x2af   :  { %627 = vmatmul.mubr.msk.bf16.vlgmr.msra.gmra.mrb[4].mxu1 %vm464_vm2, %v424_v5 }
 0x382   :  { %v502_v7 = vpop.f32.mrb[4].mxu1 }
 0x383   :  { %v503_v8 = vadd.f32 %v556_v6, %v502_v7  ;;  %v628_v9 = vpop.f32.mrb[5].mxu1 }
 0x384   :  { %v505_v10 = vpop.f32.mrb[6].mxu1 }
 0x385   :  { %v508_v11 = vpack.c.bf16 %v503_v8, %v503_v8  ;;  %v629_v12 = vpop.f32.mrb[7].mxu1 }
 0x387   :  { %509 = vst [vmem:[#allocation5] sm:$0x1] %v508_v11 }
 0x388   :  { %704 = shalt.err (!%p701_p12)
}
 0x389   :  { %s705_s17 = scalar_lea.hbm %s886_s9, 16 }
 0x38a   :  { %p706_p13 = scmp.ne.s32.totalorder %s886_s9, %s705_s17  ;;  %p709_p0 = scmp.lt.u32.totalorder %s705_s17, %s886_s9 }
 0x38c   :  { %p711_p1 = pnand %p709_p0, %p706_p13 }
 0x38e   :  { %714 = shalt.err (!%p711_p1)
}
 0x38f   :  { %519 = dma.vmem_to_hbm [thread:$0]  %s517_s14, 16, %s886_s9, [#allocation4]  }
 0x390   :  { %717 = dma.done.wait [#allocation4], 16  }
 0x391   :  { %718 = vsyncadd [#allocation4], 4294967280 }
 0x392   :  { %523 = vsyncpa [#allocation3], 1 }
 0x393   :  { %524 = vsyncpa [#allocation4], 1 }

</bundles_post_ra>
